<compile_context>
chip_gen: v5e
topology: v5e:2x2
jax: 0.10.0
libtpu: 0.0.40
codegen_flags: <defaults>
</compile_context>

<pallas_src>
import jax
import jax.numpy as jnp
from jax.experimental import pallas as pl
from jax.experimental.pallas import tpu as pltpu


# --------------------------------------------------------------------------
# Kernel
# --------------------------------------------------------------------------
def _eca_kernel(w_ref, x_ref, o_ref):
    """Fused ECA: global-avg-pool -> k-tap channel conv -> sigmoid -> scale.

    w_ref: (k,) f32 conv taps in SMEM (cross-correlation, zero padding).
    x_ref: (B_tile, C, HW) input tile in VMEM.
    o_ref: (B_tile, C, HW) output tile in VMEM.
    """
    xb = x_ref[...]                                    # (Bt, C, HW)
    bt, c, hw = xb.shape
    k = w_ref.shape[0]
    pad = (k - 1) // 2

    # Global average pool over the spatial (lane) axis with f32 accumulation,
    # without materializing a full-tile f32 upcast of xb.
    y = jnp.sum(xb, axis=-1, keepdims=True, dtype=jnp.float32) * (1.0 / float(hw))

    # k-tap 1D conv across channels with zero padding: k static slices of a
    # zero-padded copy along the channel (sublane) axis, weighted by SMEM
    # scalars.  Pure shift-and-add on the VPU -- no MXU, no O(C^2) matrix.
    if pad > 0:
        zpad = jnp.zeros((bt, pad, 1), jnp.float32)
        y_pad = jnp.concatenate([zpad, y, zpad], axis=1)            # (Bt, C+2p, 1)
    else:
        y_pad = y
    acc = w_ref[0] * y_pad[:, 0:c, :]
    for t in range(1, k):                              # k is static & small
        acc = acc + w_ref[t] * y_pad[:, t:t + c, :]

    # Sigmoid (EUP), cast to x's dtype before the broadcast multiply so the
    # streaming multiply stays in the input dtype (VALU win on v6e/v7x; on
    # v5e the multiply upcasts anyway, the cast is just harmless there).
    attn = jax.nn.sigmoid(acc).astype(o_ref.dtype)     # (Bt, C, 1)
    o_ref[...] = xb * attn                             # broadcast over HW


# --------------------------------------------------------------------------
# Tiling / VMEM budgeting helpers
# --------------------------------------------------------------------------
def _round_up(x, m):
    return (x + m - 1) // m * m


def _vmem_capacity_bytes():
    """Physical VMEM of the current chip; conservative 64 MiB fallback."""
    try:
        cap = int(getattr(pltpu.get_tpu_info(), "vmem_capacity_bytes", 0))
        if cap > 0:
            return cap
    except Exception:
        pass
    return 64 * 2**20  # v7x-sized fallback; safe lower bound for v5e/v6e too


def _padded_image_bytes(c, hw, dtype):
    """VMEM bytes of one (C, HW) image slab including (sublane, lane) padding."""
    itemsize = jnp.dtype(dtype).itemsize
    sublane = 8 * max(1, 4 // itemsize)        # 8 for f32, 16 for bf16, 32 for i8
    return _round_up(c, sublane) * _round_up(hw, 128) * itemsize


def _tile_vmem_bytes(b_tile, c, hw, dtype):
    """Estimated peak VMEM for one grid step (double-buffered I/O + temps)."""
    img = _padded_image_bytes(c, hw, dtype)
    bufs = 4 * b_tile * img                    # 2x double-buffered input + output
    # Possible f32 operand copy for the pooling reduce when input is sub-f32.
    f32_img = _round_up(c, 8) * _round_up(hw, 128) * 4
    temps = 0 if jnp.dtype(dtype) == jnp.dtype(jnp.float32) else b_tile * f32_img
    # (Bt, C, 1)-shaped f32 pool / conv / attention vectors, lane-padded to 128.
    temps += 4 * b_tile * _round_up(c, 8) * 128 * 4
    return bufs + temps


def _pick_batch_tile(batch, c, hw, dtype, usable_vmem, target_tile_bytes):
    """Largest batch tile that fits the tile target and the VMEM budget."""
    img = _padded_image_bytes(c, hw, dtype)
    per_b_vmem = _tile_vmem_bytes(1, c, hw, dtype)
    b_tile = min(
        batch,
        max(1, target_tile_bytes // max(img, 1)),
        max(1, usable_vmem // max(per_b_vmem, 1)),
    )
    if batch > 1:
        # Keep >= 2 grid steps so both v7x TensorCores get work and input DMA /
        # compute / output DMA of consecutive steps can overlap.
        b_tile = min(b_tile, -(-batch // 2))
    return max(1, b_tile)


# --------------------------------------------------------------------------
# Forward pass
# --------------------------------------------------------------------------
def eca_forward(x, conv_weight, *, donate_input=False):
    """ECA forward pass.

    Args:
      x: (B, C, H, W) array (NCHW, same as the PyTorch module).
      conv_weight: (k,) 1D conv kernel (PyTorch weight is (1, 1, k)).
      donate_input: alias x's HBM buffer to the output (use only if the caller
        no longer needs x); saves allocation pressure, not bandwidth.

    Returns:
      (B, C, H, W) array: x * sigmoid(conv1d(avgpool(x))).
    """
    B, C, H, W = x.shape
    HW = H * W
    w = jnp.asarray(conv_weight).reshape(-1).astype(jnp.float32)
    k = int(w.shape[0])
    if k % 2 == 0:
        raise ValueError(
            "ECA expects an odd 1D conv kernel size (PyTorch padding=(k-1)//2)."
        )

    dtype_bytes = jnp.dtype(x.dtype).itemsize

    # Generation-aware VMEM budget.
    cap = _vmem_capacity_bytes()
    usable = max(16 * 2**20, cap - 8 * 2**20)          # compiler / misc slack
    # Pure HBM read+write kernel: bigger tiles amortize the ~0.35 us/step
    # overhead.  v7x (64 MiB VMEM) gets a smaller target than v5e/v6e.
    target_tile = 12 * 2**20 if cap <= 64 * 2**20 else 16 * 2**20

    b_tile = _pick_batch_tile(B, C, HW, x.dtype, usable, target_tile)
    grid = (pl.cdiv(B, b_tile),)

    tile_vmem = _tile_vmem_bytes(b_tile, C, HW, x.dtype)
    vmem_limit = int(min(cap, max(32 * 2**20, tile_vmem + 8 * 2**20)))

    x_flat = x.reshape(B, C, HW)

    cost = pl.CostEstimate(
        flops=2 * B * C * (HW + k),
        transcendentals=B * C,
        bytes_accessed=2 * B * C * HW * dtype_bytes + k * 4,
    )

    out_flat = pl.pallas_call(
        _eca_kernel,
        out_shape=jax.ShapeDtypeStruct((B, C, HW), x.dtype),
        grid_spec=pltpu.PrefetchScalarGridSpec(
            num_scalar_prefetch=0,
            grid=grid,
            in_specs=[
                pl.BlockSpec(memory_space=pltpu.MemorySpace.SMEM),    # conv taps
                pl.BlockSpec((b_tile, C, HW), lambda b: (b, 0, 0)),   # x tile
            ],
            out_specs=pl.BlockSpec((b_tile, C, HW), lambda b: (b, 0, 0)),
        ),
        compiler_params=pltpu.CompilerParams(
            dimension_semantics=("parallel",),
            vmem_limit_bytes=vmem_limit,
        ),
        cost_estimate=cost,
        input_output_aliases={1: 0} if donate_input else {},
    )(w, x_flat)

    return out_flat.reshape(B, C, H, W)


# --------------------------------------------------------------------------
# Pure-JAX reference (matches the PyTorch module)
# --------------------------------------------------------------------------
def eca_reference(x, conv_weight):
    B, C, H, W = x.shape
    k = conv_weight.shape[0]
    pad = (k - 1) // 2
    y = jnp.mean(x, axis=(2, 3))                          # (B, C)
    y_pad = jnp.pad(y, ((0, 0), (pad, pad)))              # zero padding
    out = jnp.zeros_like(y)
    for t in range(k):
        out = out + conv_weight[t] * y_pad[:, t:t + C]
    attn = jax.nn.sigmoid(out)                            # (B, C)
    return x * attn[:, :, None, None]


if __name__ == "__main__":
    key = jax.random.PRNGKey(0)
    B, C, H, W = 2, 4, 16, 16

    x = jax.random.normal(key, (B, C, H, W), dtype=jnp.float32)
    # Deterministic synthetic conv weight (PyTorch shape (1, 1, k_size)).
    conv_weight = jnp.array([0.25, 0.5, -0.125], dtype=jnp.float32)

    out = eca_forward(x, conv_weight)
    out = jax.block_until_ready(out)

    ref = eca_reference(x, conv_weight)
    assert out.shape == x.shape
    assert jnp.allclose(out, ref, atol=1e-5, rtol=1e-5), "mismatch vs reference"

    print("KERNEL_OK")
</pallas_src>

<mosaic_0001>
module attributes {stable_mosaic.version = 11 : i64} {
  func.func @_eca_kernel(%arg0: i32, %arg1: memref<3xf32, #tpu.memory_space<smem>>, %arg2: memref<1x4x256xf32, #tpu.memory_space<vmem>>, %arg3: memref<1x4x256xf32, #tpu.memory_space<vmem>>) attributes {dimension_semantics = [#tpu.dimension_semantics<parallel>], iteration_bounds = array<i64: 2>, scalar_prefetch = 0 : i64, scratch_operands = 0 : i64, tpu.core_type = #tpu.core_type<tc>, window_params = [{transform_indices = @transform_0, window_bounds = array<i64: 3>}, {transform_indices = @transform_1, window_bounds = array<i64: 1, 4, 256>}, {transform_indices = @transform_2, window_bounds = array<i64: 1, 4, 256>}]} {
    %c0 = arith.constant 0 : index
    %c0_0 = arith.constant 0 : index
    %c0_1 = arith.constant 0 : index
    %0 = vector.load %arg2[%c0, %c0_0, %c0_1] : memref<1x4x256xf32, #tpu.memory_space<vmem>>, vector<1x4x256xf32>
    %cst = arith.constant dense<0.000000e+00> : vector<1x4xf32>
    %1 = vector.multi_reduction <add>, %0, %cst [2] : vector<1x4x256xf32> to vector<1x4xf32>
    %2 = vector.shape_cast %1 : vector<1x4xf32> to vector<1x4x1xf32>
    %cst_2 = arith.constant 3.906250e-03 : f32
    %3 = vector.broadcast %cst_2 : f32 to vector<1x4x1xf32>
    %4 = arith.mulf %2, %3 : vector<1x4x1xf32>
    %cst_3 = arith.constant 0.000000e+00 : f32
    %5 = vector.broadcast %cst_3 : f32 to vector<1x1x1xf32>
    %6 = tpu.concatenate %5, %4, %5 in 1 : vector<1x1x1xf32>, vector<1x4x1xf32>, vector<1x1x1xf32> -> vector<1x6x1xf32>
    %c0_4 = arith.constant 0 : index
    %7 = memref.load %arg1[%c0_4] : memref<3xf32, #tpu.memory_space<smem>>
    %8 = vector.extract_strided_slice %6 {offsets = [0, 0, 0], sizes = [1, 4, 1], strides = [1, 1, 1]} : vector<1x6x1xf32> to vector<1x4x1xf32>
    %9 = vector.broadcast %7 : f32 to vector<1x4x1xf32>
    %10 = arith.mulf %9, %8 : vector<1x4x1xf32>
    %c1 = arith.constant 1 : index
    %11 = memref.load %arg1[%c1] : memref<3xf32, #tpu.memory_space<smem>>
    %12 = vector.extract_strided_slice %6 {offsets = [0, 1, 0], sizes = [1, 4, 1], strides = [1, 1, 1]} : vector<1x6x1xf32> to vector<1x4x1xf32>
    %13 = vector.broadcast %11 : f32 to vector<1x4x1xf32>
    %14 = arith.mulf %13, %12 : vector<1x4x1xf32>
    %15 = arith.addf %10, %14 : vector<1x4x1xf32>
    %c2 = arith.constant 2 : index
    %16 = memref.load %arg1[%c2] : memref<3xf32, #tpu.memory_space<smem>>
    %17 = vector.extract_strided_slice %6 {offsets = [0, 2, 0], sizes = [1, 4, 1], strides = [1, 1, 1]} : vector<1x6x1xf32> to vector<1x4x1xf32>
    %18 = vector.broadcast %16 : f32 to vector<1x4x1xf32>
    %19 = arith.mulf %18, %17 : vector<1x4x1xf32>
    %20 = arith.addf %15, %19 : vector<1x4x1xf32>
    %21 = arith.negf %20 : vector<1x4x1xf32>
    %22 = math.exp %21 : vector<1x4x1xf32>
    %cst_5 = arith.constant 1.000000e+00 : f32
    %23 = vector.broadcast %cst_5 : f32 to vector<1x4x1xf32>
    %24 = arith.addf %23, %22 : vector<1x4x1xf32>
    %25 = arith.divf %23, %24 : vector<1x4x1xf32>
    %26 = vector.broadcast %25 : vector<1x4x1xf32> to vector<1x4x256xf32>
    %27 = arith.mulf %0, %26 : vector<1x4x256xf32>
    %c0_6 = arith.constant 0 : index
    %c0_7 = arith.constant 0 : index
    %c0_8 = arith.constant 0 : index
    %28 = vector.load %arg3[%c0_6, %c0_7, %c0_8] : memref<1x4x256xf32, #tpu.memory_space<vmem>>, vector<1x4x256xf32>
    tpu.vector_store %arg3[%c0_6, %c0_7, %c0_8], %27 {strides = array<i32>} : memref<1x4x256xf32, #tpu.memory_space<vmem>>, vector<1x4x256xf32>,
    return
  }
  func.func @transform_0(%arg0: i32) -> i32 {
    %c0_i32 = arith.constant 0 : i32
    %c0_i32_0 = arith.constant 0 : i32
    return %c0_i32 : i32
  }
  func.func @transform_1(%arg0: i32) -> (i32, i32, i32) {
    %c0_i32 = arith.constant 0 : i32
    %c0_i32_0 = arith.constant 0 : i32
    %c0_i32_1 = arith.constant 0 : i32
    return %arg0, %c0_i32, %c0_i32_0 : i32, i32, i32
  }
  func.func @transform_2(%arg0: i32) -> (i32, i32, i32) {
    %c0_i32 = arith.constant 0 : i32
    %c0_i32_0 = arith.constant 0 : i32
    %c0_i32_1 = arith.constant 0 : i32
    return %arg0, %c0_i32, %c0_i32_0 : i32, i32, i32
  }
}

</mosaic_0001>

<bundles_post_ra>
// kernel: tpu_custom_call.1
= control target key start
LH: loop header
LB: loop body
LE: loop exit
PB: predicated region body
PF: predicated region fallthrough
CT: control target
= control target key end

     0   :  { %7 = vsyncpa [#allocation5], 0  ;;  %s705_s0 = inlined_call_operand.hbm [shape: f32[3], index: 0, kind: input, shape index: {}]   ;;  %s706_s1 = inlined_call_operand.hbm [shape: f32[2,4,256], index: 1, kind: input, shape index: {}]   ;;  %s707_s2 = inlined_call_operand.hbm [shape: f32[2,4,256], index: 2, kind: output, shape index: {}]  }
   0x1   :  { %8 = vsyncpa [#allocation3], 0 }
   0x2   :  { %10 = vsyncpa [#allocation3 + $0x1], 0 }
   0x3   :  { %11 = vsyncpa [#allocation4], 0 }
   0x4   :  { %13 = vsyncpa [#allocation4 + $0x1], 0  ;;  %s563_s9 = smov 0   ;;  %s565_s10 = smov 0  }
   0x5   :  { %s567_s11 = smov 0   ;;  %s569_s12 = smov 0  }
   0x6 LB: > { %s584_s13 = sadd.s32 4294967295, %s543_s12   ;;  %s343_s14 = sadd.s32 4294967294, %s543_s12   ;;  %s543_s12 = sphi %s569_s12, %s717_s12   ;;  %s539_s11 = sphi %s567_s11, %s716_s11   ;;  %s535_s10 = sphi %s565_s10, %s715_s10   ;;  %s531_s9 = sphi %s563_s9, %s714_s9  }
   0x7   : > { %p60_p0 = scmp.ne.s32.totalorder %s535_s10, %s531_s9  ;;  %p61_p1 = scmp.eq.s32.totalorder %s584_s13, 0 }
   0x8   : > { %p84_p2 = scmp.eq.s32.totalorder %s584_s13, 1  ;;  %p90_p3 = scmp.eq.s32.totalorder %s343_s14, 1 }
   0x9   : > { %p593_p4 = por %p61_p1, %p60_p0  ;;  %p344_p5 = scmp.ge.s32.totalorder %s543_s12, 1 }
   0xa   : > { %p598_p6 = por %p90_p3, %p60_p0  ;;  %p97_p7 = scmp.lt.s32.totalorder %s543_s12, 3 }
   0xb   : > { %s109_s19 = sshll.u32 %s705_s0, 4  ;;  %s614_s21 = sadd.s32 1, %s543_s12   ;;  %s110_s19 = int_to_ptr.hbm [resolvable:$true] %s109_s19 }
   0xc   : > { %p606_p8 = pnand %p344_p5, %p97_p7  ;;  %s44_s22 = ssub.s32 %s543_s12, %s614_s21 }
   0xd   : > { %p45_p12 = scmp.eq.s32.totalorder %s44_s22, 0  ;;  %s47_s23 = sadd.s32 1, %s539_s11 }
   0xe   : > { %p372_p10 = pneg %p606_p8  ;;  %p54_p13 = scmp.ne.s32.totalorder %s539_s11, %s535_s10 }
   0xf   : > { %s545_s24 = smov [#allocation2]   ;;  %p55_p0 = scmp.eq.s32.totalorder %s543_s12, 0 }
  0x10   : > { %p373_p11 = pnand %p372_p10, %p61_p1  ;;  %p629_p3 = por %p84_p2, %p54_p13 }
  0x11   : > { %s624_s25 = scalar_select %p45_p12, %s539_s11, %s47_s23  }
  0x12   : > { %375 = dma.hbm_to_smem (!%p373_p11), %s110_s19, 16, %s545_s24, [#allocation5]  }
  0x13   : > { %s120_s27 = sand.u32 1, %s539_s11   ;;  %p56_p5 = por %p55_p0, %p54_p13 }
  0x14   : > { %p385_p7 = scmp.lt.s32.totalorder %s543_s12, 2  ;;  %s347_s28 = sshll.u32 %s120_s27, 3 }
  0x15   : > { %s362_s29 = sshll.u32 %s543_s12, 3  ;;  %s124_s6 = scalar_lea.vmem [#allocation6], %s347_s28 }
  0x16   : > { %s129_s4 = scalar_lea.hbm %s706_s1, %s362_s29  ;;  %s133_s7 = sshll.u32 %s124_s6, 4  ;;  %s134_s7 = int_to_ptr.vmem [resolvable:$true] %s133_s7 }
  0x17   : > { %s131_s5 = sshll.u32 %s129_s4, 4  ;;  %p639_p10 = pnand %p385_p7, %p56_p5  ;;  %s132_s5 = int_to_ptr.hbm [resolvable:$true] %s131_s5 }
  0x18   : > { %s121_s14 = scalar_lea.sflag [#allocation3], %s120_s27  ;;  %s443_s17 = sshra.s32 %s132_s5, 4  ;;  %s444_s17 = int_to_ptr.hbm [resolvable:$true] %s443_s17 }
  0x19   : > { %s445_s18 = scalar_lea.hbm %s444_s17, 8  ;;  %p447_p11 = pneg %p639_p10 }
  0x1a   : > { %p446_p2 = scmp.ne.s32.totalorder %s444_s17, %s445_s18  ;;  %s450_s23 = scalar_lea.hbm %s706_s1, 16 }
  0x1b   : > { %p451_p0 = scmp.lt.s32.totalorder %s444_s17, %s706_s1  ;;  %p452_p5 = scmp.lt.s32.totalorder %s450_s23, %s445_s18 }
  0x1c   : > { %p448_p12 = pnand %p447_p11, %p446_p2 }
  0x1d   : > { %p453_p7 = por %p452_p5, %p451_p0 }
  0x1e   : > { %p449_p13 = pneg %p448_p12 }
  0x20   : > { %p454_p9 = pnand %p453_p7, %p449_p13 }
  0x22   : > { %457 = shalt.err (!%p454_p9)
}
  0x23   : > { %379 = dma.hbm_to_vmem [thread:$0]  (!%p639_p10), %s132_s5, 128, %s134_s7, %s121_s14  }
  0x24   : > { %142 = sbr.rel (%p606_p8) target bundleno = 340 (0x154), region = 28 }
  0x29   : > { %518 = dma.done.wait (%p61_p1), [#allocation5], 16  }
  0x2a   : > { %520 = vsyncadd (%p61_p1), [#allocation5], 4294967280  ;;  %s660_s27 = sand.u32 1, %s535_s10  }
  0x2b   : > { %s352_s29 = sshll.u32 %s660_s27, 3  ;;  %s150_s30 = scalar_lea.sflag [#allocation3], %s660_s27 }
  0x2c   : > { %s153_s3 = scalar_lea.vmem [#allocation6], %s352_s29 }
  0x2d   : > { %522 = dma.done.wait (%p593_p4), %s150_s30, 128  }
  0x2e   : > { %524 = vsyncadd (%p593_p4), %s150_s30, 4294967168 }
  0x2f   : > { %159 = sfence }
  0x30   : > { %v176_v0 = vld [vmem:[%s153_s3] sm:$0xff]  ;;  %vm183_vm0 = vcmask 1043456   ;;  %s354_s20 = sld [smem:[#allocation2 + $0x1]]  ;;  %v546_v6 = vmov 0   ;;  %vm193_vm1 = vcmask 1040384   ;;  %vm195_vm2 = vcmask 1044480  }
  0x31   : > { %178 = vst [vmem:[#allocation1] ss:$2 sm:$0xff] %v176_v0  ;;  %423 = vset.pattern.permute.xlu0 %v546_v6  ;;  %s355_s4 = sld [smem:[#allocation2 + $0x2]]  ;;  %v547_v35 = vmov 839922192   ;;  %s363_s15 = sshll.u32 %s584_s13, 3 }
  0x32   : > { %s197_s5 = sld [smem:[#allocation2]]  ;;  %v238_v36 = vunpack.c.l.s4 %v547_v35  ;;  %s256_s8 = scalar_lea.hbm %s707_s2, %s363_s15 }
  0x33   : > { %s175_s14 = scalar_lea.vmem [#allocation7], %s352_s29  ;;  %s260_s18 = sshll.u32 %s256_s8, 4  ;;  %s261_s18 = int_to_ptr.hbm [resolvable:$true] %s260_s18 }
  0x34   : > { %v239_v37 = vunpack.c.0.s8 %v238_v36  ;;  %s258_s17 = sshll.u32 %s175_s14, 4  ;;  %s245_s19 = scalar_lea.sflag [#allocation4], %s660_s27  ;;  %s259_s17 = int_to_ptr.vmem [resolvable:$true] %s258_s17 }
  0x35   : > { %s487_s22 = sshra.s32 %s261_s18, 4  ;;  %s493_s28 = scalar_lea.hbm %s707_s2, 16  ;;  %s488_s22 = int_to_ptr.hbm [resolvable:$true] %s487_s22 }
  0x36   : > { %v201_v10 = vstv %s354_s20  ;;  %s489_s13 = scalar_lea.hbm %s488_s22, 8  ;;  %p494_p9 = scmp.lt.s32.totalorder %s488_s22, %s707_s2 }
  0x37   : > { %v208_v11 = vstv %s355_s4  ;;  %p490_p1 = scmp.ne.s32.totalorder %s488_s22, %s489_s13  ;;  %p495_p10 = scmp.lt.s32.totalorder %s493_s28, %s489_s13 }
  0x38   : > { %v179_v1 = vld.sshfl [vmem:[#allocation1] sm:$0xff pattern:$0x75316420]  ;;  %v180_v2 = vld.sshfl [vmem:[#allocation1 + $0x8] sm:$0xff pattern:$0x75316420]  ;;  %v198_v13 = vstv %s197_s5 }
  0x39   : > { %v184_v3 = vsel %vm183_vm0, %v179_v1, 0.0  ;;  %v185_v4 = vsel %vm183_vm0, %v180_v2, 0.0  ;;  %p491_p4 = pnand %p490_p1, %p629_p3  ;;  %p496_p2 = por %p495_p10, %p494_p9 }
  0x3a   : > { %v186_v5 = vadd.f32 %v185_v4, %v184_v3 }
  0x3b   : > { %p492_p8 = pneg %p491_p4 }
  0x3c   : > { %187 = vadd.xlane.f32.xlu0 %v186_v5 }
  0x3d   : > { %p497_p11 = pnand %p496_p2, %p492_p8 }
  0xaf   : > { %v188_v7 = vpop.xlane.xlu0 %187 }
  0xb0   : > { %v189_v8 = vmul.f32 0.00390625, %v188_v7 }
  0xb2   : > { %v191_v9 = vrot.slane %v189_v8, 7 }
  0xb4   : > { %v194_v12 = vsel %vm193_vm1, 0.0, %v191_v9 }
  0xb5   : > { %v196_v14 = vsel %vm195_vm2, %v194_v12, 0.0 }
  0xb6   : > { %v202_v15 = vmul.f32 %v201_v10, %v196_v14  ;;  %v209_v16 = vmul.f32 %v208_v11, %v196_v14  ;;  %v199_v17 = vmul.f32 %v198_v13, %v196_v14 }
  0xb8   : > { %v204_v18 = vrot.slane %v202_v15, 1  ;;  %v211_v20 = vrot.slane %v209_v16, 2 }
  0xba   : > { %v206_v19 = vadd.f32 %v204_v18, %v199_v17 }
  0xbc   : > { %v213_v21 = vadd.f32 %v211_v20, %v206_v19 }
  0xbe   : > { %v356_v22 = vmul.f32 -1.442695, %v213_v21 }
  0xc0   : > { %424 = vpow2.f32 %v356_v22 }
  0xc6   : > { %v425_v23 = vpop.eup %424 }
  0xc7   : > { %v217_v24 = vadd.f32 1.0, %v425_v23 }
  0xc9   : > { %426 = vrcp.f32 %v217_v24  ;;  %v229_v28 = vand.u32 2147483648, %v217_v24  ;;  %v227_v30 = vand.u32 2147483647, %v217_v24  ;;  %vm223_vm4 = vweird.f32 %v217_v24 }
  0xcb   : > { %v230_v32 = vor.u32 1.1754944e-38, %v229_v28  ;;  %vm228_vm6 = vcmp.eq.f32.partialorder %v227_v30, 8.507059e+37 }
  0xcf   : > { %v427_v25 = vpop.eup %426 }
  0xd0   : > { %v219_v26 = vmul.f32 %v427_v25, %v217_v24  ;;  %vm224_vm3 = vweird.f32 %v427_v25 }
  0xd1   : > { %vm225_vm5 = vmor %vm223_vm4, %vm224_vm3 }
  0xd2   : > { %v220_v27 = vsub.f32 1.0, %v219_v26 }
  0xd4   : > { %v221_v29 = vmul.f32 %v427_v25, %v220_v27 }
  0xd6   : > { %v222_v31 = vadd.f32 %v427_v25, %v221_v29 }
  0xd8   : > { %v226_v33 = vsel %vm225_vm5, %v427_v25, %v222_v31 }
  0xd9   : > { %v231_v34 = vsel %vm228_vm6, %v230_v32, %v226_v33 }
  0xda   : > { %235 = vperm.xlu0 %423, %v231_v34  }
 0x14c   : > { %v236_v38 = vpop.permute.xlu0 %235 }
 0x14d   : > { %v240_v39 = vperm.slane %v236_v38, %v239_v37 }
 0x14f   : > { %v242_v40 = vmul.f32 %v240_v39, %v176_v0 }
 0x151   : > { %243 = vst [vmem:[%s175_s14] sm:$0xff] %v242_v40 }
 0x152   : > { %500 = shalt.err (!%p497_p11)
}
 0x153   : > { %370 = dma.vmem_to_hbm [thread:$0]  (%p629_p3), %s259_s17, 128, %s261_s18, %s245_s19  }
 0x154 PF: > { %s272_s27 = sand.u32 1, %s531_s9   ;;  %p713_p12 = scmp.ge.s32.totalorder %s543_s12, 2 }
 0x155   : > { %s273_s3 = scalar_lea.sflag [#allocation4], %s272_s27 }
 0x156   : > { %p381_p13 = pnand %p713_p12, %p598_p6 }
 0x158   : > { %p382_p0 = pneg %p381_p13 }
 0x15a   : > { %526 = dma.done.wait (%p382_p0), %s273_s3, 128  }
 0x15b   : > { %528 = vsyncadd (%p382_p0), %s273_s3, 4294967168  ;;  %p16_p5 = scmp.ge.s32.totalorder %s614_s21, 4   ;;  %s714_s9 = smov %s535_s10 }
 0x15c   : > { %s715_s10 = smov %s539_s11  ;;  %s716_s11 = smov %s624_s25 }
 0x15d   : > { %s717_s12 = smov %s614_s21  ;;  %18 = sbr.rel (!%p16_p5) target bundleno = 6 (0x6), region = 78 }
 0x162   :  { %279 = vsyncpa [#allocation3], 1 }
 0x163   :  { %281 = vsyncpa [#allocation3 + $0x1], 1 }
 0x164   :  { %282 = vsyncpa [#allocation4], 1 }
 0x165   :  { %284 = vsyncpa [#allocation4 + $0x1], 1 }
 0x166   :  { %285 = vsyncpa [#allocation5], 1 }
 0x167   :  { %287 = vsyncpa [#allocation5 + $0x1], 1 }

</bundles_post_ra>
